<compile_context>
chip_gen: v6e
topology: v6e:2x2x1
jax: 0.10.0
libtpu: 0.0.40
codegen_flags: <defaults>
</compile_context>

<pallas_src>
from functools import partial

import jax
import jax.numpy as jnp
from jax import lax
from jax.experimental import pallas as pl
from jax.experimental.pallas import tpu as pltpu


def _lstm_kernel(x_ref, wih_ref, bias_ref, whh_ref,
                 out_ref, hn_ref, cn_ref, xproj_ref):
    """Single-invocation LSTM (gate order [i, f, g, o], zero-init h0/c0).

    x_ref     : (S, B, 1)   raw input
    wih_ref   : (1, 4H)     W_ih^T (input_size == 1)
    bias_ref  : (1, 4H)     b_ih + b_hh
    whh_ref   : (H, 4H)     W_hh^T (resident for the whole loop)
    out_ref   : (S, B, H)   all hidden states
    hn_ref    : (1, B, H)   final hidden state
    cn_ref    : (1, B, H)   final cell state
    xproj_ref : (S, B, 4H)  VMEM scratch for the hoisted input projection
    """
    S, B, _ = x_ref.shape
    H = whh_ref.shape[0]
    G = 4 * H

    # ---------------- prologue: off the serial h->h chain ----------------
    # Input projection for ALL timesteps at once: one broadcast-FMA over the
    # whole (S, B, 4H) block (input_size == 1).
    wih = wih_ref[...].reshape(1, 1, G)
    bias = bias_ref[...].reshape(1, 1, G)
    xproj_ref[...] = x_ref[...].astype(jnp.float32) * wih + bias

    whh = whh_ref[...]                                   # (H, 4H), kept in vregs

    # Loop-invariant per-lane gate constants (hoisted: the fully-unrolled loop
    # would otherwise re-materialize them every step).
    lane = lax.broadcasted_iota(jnp.int32, (B, G), 1)
    is_g = jnp.logical_and(lane >= 2 * H, lane < 3 * H)
    pre = jnp.where(is_g, 2.0, 1.0).astype(jnp.float32)        # x2 on g lanes
    post_add = jnp.where(is_g, -1.0, 0.0).astype(jnp.float32)  # -1 on g lanes

    h0 = jnp.zeros((B, H), jnp.float32)                  # PyTorch zero-init hx
    c0 = jnp.zeros((B, H), jnp.float32)

    def step(t, carry):
        h_prev, c_prev = carry                           # (B, H), (B, H)
        # Recurrent matmul is the only MXU op on the serial path.
        gates = xproj_ref[t] + jnp.dot(
            h_prev, whh, preferred_element_type=jnp.float32)     # (B, 4H)

        # Single full-vreg EUP pass: sigmoid everywhere; g lanes become tanh
        # via tanh(x) = 2*sigmoid(2x) - 1 (one VPU mul + one FMA fixup).
        a = jax.nn.sigmoid(pre * gates)
        act = pre * a + post_add                         # i,f,o = sigmoid, g = tanh
        i_g = act[:, 0 * H:1 * H]
        f_g = act[:, 1 * H:2 * H]
        g_g = act[:, 2 * H:3 * H]
        o_g = act[:, 3 * H:4 * H]

        c_new = f_g * c_prev + i_g * g_g
        h_new = o_g * jnp.tanh(c_new)

        # Stays in VMEM; writeback to HBM happens once after the kernel.
        out_ref[t] = h_new.astype(out_ref.dtype)
        return (h_new, c_new)

    h_last, c_last = lax.fori_loop(0, S, step, (h0, c0), unroll=True)

    hn_ref[0] = h_last.astype(hn_ref.dtype)
    cn_ref[0] = c_last.astype(cn_ref.dtype)


@jax.jit
def lstm_encoder_forward(x, w_ih, w_hh, b_ih, b_hh):
    """Forward pass of lstm_encoder (single-layer nn.LSTM).

    x     : (S, B, 1) float32
    w_ih  : (4H, 1)   float32   (PyTorch weight_ih_l0, input_size == 1)
    w_hh  : (4H, H)   float32   (PyTorch weight_hh_l0)
    b_ih  : (4H,)     float32
    b_hh  : (4H,)     float32
    returns (lstm_out (S,B,H), (h_n (1,B,H), c_n (1,B,H)))
    """
    S, B, I = x.shape
    H = w_hh.shape[1]
    G = 4 * H

    # Trivial weight-layout prep (free reshapes + one tiny add/transpose, fused by jit).
    wih_row = w_ih.reshape(1, G).astype(jnp.float32)          # W_ih^T   (1, 4H)
    bias_row = (b_ih + b_hh).reshape(1, G).astype(jnp.float32)
    whh_t = jnp.transpose(w_hh).astype(jnp.float32)           # W_hh^T   (H, 4H)

    out_shapes = (
        jax.ShapeDtypeStruct((S, B, H), x.dtype),   # lstm_out
        jax.ShapeDtypeStruct((1, B, H), x.dtype),   # h_n
        jax.ShapeDtypeStruct((1, B, H), x.dtype),   # c_n
    )

    vmem_spec = pl.BlockSpec(memory_space=pltpu.MemorySpace.VMEM)

    lstm_out, h_n, c_n = pl.pallas_call(
        _lstm_kernel,
        out_shape=out_shapes,
        in_specs=[vmem_spec, vmem_spec, vmem_spec, vmem_spec],
        out_specs=(vmem_spec, vmem_spec, vmem_spec),
        scratch_shapes=[pltpu.VMEM((S, B, G), jnp.float32)],
    )(x, wih_row, bias_row, whh_t)

    return lstm_out, (h_n, c_n)


def _reference_lstm(x, w_ih, w_hh, b_ih, b_hh):
    """Pure-JAX reference (same semantics as torch.nn.LSTM single layer)."""
    S, B, I = x.shape
    H = w_hh.shape[1]
    b = b_ih + b_hh
    wih_vec = w_ih[:, 0]                                  # input_size == 1

    def step(carry, x_t):
        h, c = carry
        gates = x_t * wih_vec + h @ w_hh.T + b            # (B,1)*(4H,) -> (B,4H)
        i_g = jax.nn.sigmoid(gates[:, 0 * H:1 * H])
        f_g = jax.nn.sigmoid(gates[:, 1 * H:2 * H])
        g_g = jnp.tanh(gates[:, 2 * H:3 * H])
        o_g = jax.nn.sigmoid(gates[:, 3 * H:4 * H])
        c_new = f_g * c + i_g * g_g
        h_new = o_g * jnp.tanh(c_new)
        return (h_new, c_new), h_new

    h0 = jnp.zeros((B, H), x.dtype)
    c0 = jnp.zeros((B, H), x.dtype)
    (h_n, c_n), outs = lax.scan(step, (h0, c0), x)
    return outs, (h_n[None], c_n[None])


if __name__ == "__main__":
    # Small shapes consistent with the module (input_size=1; forward reshapes to it).
    # B=8 fills the 8-sublane vreg dimension.
    SEQ, BATCH, INPUT_SIZE, HIDDEN = 8, 8, 1, 32

    key = jax.random.PRNGKey(0)
    k_x, k_wih, k_whh, k_bih, k_bhh = jax.random.split(key, 5)

    # Deterministic parameter init, uniform(-1/sqrt(H), 1/sqrt(H)) like PyTorch.
    bound = 1.0 / (HIDDEN ** 0.5)
    w_ih = jax.random.uniform(k_wih, (4 * HIDDEN, INPUT_SIZE), jnp.float32, -bound, bound)
    w_hh = jax.random.uniform(k_whh, (4 * HIDDEN, HIDDEN), jnp.float32, -bound, bound)
    b_ih = jax.random.uniform(k_bih, (4 * HIDDEN,), jnp.float32, -bound, bound)
    b_hh = jax.random.uniform(k_bhh, (4 * HIDDEN,), jnp.float32, -bound, bound)

    x = jax.random.normal(k_x, (SEQ, BATCH, INPUT_SIZE), jnp.float32)

    lstm_out, (h_n, c_n) = lstm_encoder_forward(x, w_ih, w_hh, b_ih, b_hh)
    jax.block_until_ready((lstm_out, h_n, c_n))

    ref_out, (ref_h, ref_c) = _reference_lstm(x, w_ih, w_hh, b_ih, b_hh)
    assert lstm_out.shape == (SEQ, BATCH, HIDDEN)
    assert h_n.shape == (1, BATCH, HIDDEN) and c_n.shape == (1, BATCH, HIDDEN)
    assert jnp.allclose(lstm_out, ref_out, atol=1e-5, rtol=1e-5)
    assert jnp.allclose(h_n, ref_h, atol=1e-5, rtol=1e-5)
    assert jnp.allclose(c_n, ref_c, atol=1e-5, rtol=1e-5)

    print("KERNEL_OK")
</pallas_src>

<mosaic_0001>
module attributes {stable_mosaic.version = 11 : i64} {
  func.func @_lstm_kernel(%arg0: memref<8x8x1xf32, #tpu.memory_space<vmem>>, %arg1: memref<1x128xf32, #tpu.memory_space<vmem>>, %arg2: memref<1x128xf32, #tpu.memory_space<vmem>>, %arg3: memref<32x128xf32, #tpu.memory_space<vmem>>, %arg4: memref<8x8x32xf32, #tpu.memory_space<vmem>>, %arg5: memref<1x8x32xf32, #tpu.memory_space<vmem>>, %arg6: memref<1x8x32xf32, #tpu.memory_space<vmem>>, %arg7: memref<8x8x128xf32, #tpu.memory_space<vmem>>) attributes {dimension_semantics = [], scalar_prefetch = 0 : i64, scratch_operands = 1 : i64, tpu.core_type = #tpu.core_type<tc>} {
    %c0 = arith.constant 0 : index
    %c0_0 = arith.constant 0 : index
    %0 = vector.load %arg1[%c0, %c0_0] : memref<1x128xf32, #tpu.memory_space<vmem>>, vector<1x128xf32>
    %1 = vector.shape_cast %0 : vector<1x128xf32> to vector<1x1x128xf32>
    %c0_1 = arith.constant 0 : index
    %c0_2 = arith.constant 0 : index
    %2 = vector.load %arg2[%c0_1, %c0_2] : memref<1x128xf32, #tpu.memory_space<vmem>>, vector<1x128xf32>
    %3 = vector.shape_cast %2 : vector<1x128xf32> to vector<1x1x128xf32>
    %c0_3 = arith.constant 0 : index
    %c0_4 = arith.constant 0 : index
    %c0_5 = arith.constant 0 : index
    %4 = vector.load %arg0[%c0_3, %c0_4, %c0_5] : memref<8x8x1xf32, #tpu.memory_space<vmem>>, vector<8x8x1xf32>
    %5 = vector.broadcast %4 : vector<8x8x1xf32> to vector<8x8x128xf32>
    %6 = vector.broadcast %1 : vector<1x1x128xf32> to vector<8x8x128xf32>
    %7 = arith.mulf %5, %6 : vector<8x8x128xf32>
    %8 = vector.broadcast %3 : vector<1x1x128xf32> to vector<8x8x128xf32>
    %9 = arith.addf %7, %8 : vector<8x8x128xf32>
    %c0_6 = arith.constant 0 : index
    %c0_7 = arith.constant 0 : index
    %c0_8 = arith.constant 0 : index
    %10 = vector.load %arg7[%c0_6, %c0_7, %c0_8] : memref<8x8x128xf32, #tpu.memory_space<vmem>>, vector<8x8x128xf32>
    tpu.vector_store %arg7[%c0_6, %c0_7, %c0_8], %9 {strides = array<i32>} : memref<8x8x128xf32, #tpu.memory_space<vmem>>, vector<8x8x128xf32>,
    %c0_9 = arith.constant 0 : index
    %c0_10 = arith.constant 0 : index
    %11 = vector.load %arg3[%c0_9, %c0_10] : memref<32x128xf32, #tpu.memory_space<vmem>>, vector<32x128xf32>
    %12 = tpu.iota {dimensions = array<i32: 1>} : vector<8x128xi32>
    %c64_i32 = arith.constant 64 : i32
    %13 = vector.broadcast %c64_i32 : i32 to vector<8x128xi32>
    %14 = arith.cmpi sge, %12, %13 : vector<8x128xi32>
    %c96_i32 = arith.constant 96 : i32
    %15 = vector.broadcast %c96_i32 : i32 to vector<8x128xi32>
    %16 = arith.cmpi slt, %12, %15 : vector<8x128xi32>
    %17 = arith.andi %14, %16 : vector<8x128xi1>
    %cst = arith.constant 2.000000e+00 : f32
    %cst_11 = arith.constant 1.000000e+00 : f32
    %18 = vector.broadcast %cst : f32 to vector<8x128xf32>
    %19 = vector.broadcast %cst_11 : f32 to vector<8x128xf32>
    %20 = arith.select %17, %18, %19 : vector<8x128xi1>, vector<8x128xf32>
    %cst_12 = arith.constant -1.000000e+00 : f32
    %cst_13 = arith.constant 0.000000e+00 : f32
    %21 = vector.broadcast %cst_12 : f32 to vector<8x128xf32>
    %22 = vector.broadcast %cst_13 : f32 to vector<8x128xf32>
    %23 = arith.select %17, %21, %22 : vector<8x128xi1>, vector<8x128xf32>
    %cst_14 = arith.constant 0.000000e+00 : f32
    %24 = vector.broadcast %cst_14 : f32 to vector<8x32xf32>
    %cst_15 = arith.constant 0.000000e+00 : f32
    %25 = vector.broadcast %cst_15 : f32 to vector<8x32xf32>
    %c0_i32 = arith.constant 0 : i32
    %26 = arith.index_cast %c0_i32 : i32 to index
    %c0_16 = arith.constant 0 : index
    %c0_17 = arith.constant 0 : index
    %27 = vector.load %arg7[%26, %c0_16, %c0_17] : memref<8x8x128xf32, #tpu.memory_space<vmem>>, vector<1x8x128xf32>
    %28 = vector.shape_cast %27 : vector<1x8x128xf32> to vector<8x128xf32>
    %cst_18 = arith.constant dense<0.000000e+00> : vector<8x128xf32>
    %29 = tpu.matmul %24, %11, %cst_18 {dimension_numbers = #tpu.dot_dimension_numbers<[1], [0], [0], [1], [0, 0, 1, 1], [], []>} : vector<8x32xf32>, vector<32x128xf32>, vector<8x128xf32> -> vector<8x128xf32>
    %30 = arith.addf %28, %29 : vector<8x128xf32>
    %31 = arith.mulf %20, %30 : vector<8x128xf32>
    %32 = arith.negf %31 : vector<8x128xf32>
    %33 = math.exp %32 : vector<8x128xf32>
    %cst_19 = arith.constant 1.000000e+00 : f32
    %34 = vector.broadcast %cst_19 : f32 to vector<8x128xf32>
    %35 = arith.addf %34, %33 : vector<8x128xf32>
    %36 = arith.divf %34, %35 : vector<8x128xf32>
    %37 = arith.mulf %20, %36 : vector<8x128xf32>
    %38 = arith.addf %37, %23 : vector<8x128xf32>
    %39 = vector.extract_strided_slice %38 {offsets = [0, 0], sizes = [8, 32], strides = [1, 1]} : vector<8x128xf32> to vector<8x32xf32>
    %40 = vector.extract_strided_slice %38 {offsets = [0, 32], sizes = [8, 32], strides = [1, 1]} : vector<8x128xf32> to vector<8x32xf32>
    %41 = vector.extract_strided_slice %38 {offsets = [0, 64], sizes = [8, 32], strides = [1, 1]} : vector<8x128xf32> to vector<8x32xf32>
    %42 = vector.extract_strided_slice %38 {offsets = [0, 96], sizes = [8, 32], strides = [1, 1]} : vector<8x128xf32> to vector<8x32xf32>
    %43 = arith.mulf %40, %25 : vector<8x32xf32>
    %44 = arith.mulf %39, %41 : vector<8x32xf32>
    %45 = arith.addf %43, %44 : vector<8x32xf32>
    %46 = math.tanh %45 : vector<8x32xf32>
    %47 = arith.mulf %42, %46 : vector<8x32xf32>
    %48 = arith.index_cast %c0_i32 : i32 to index
    %c0_20 = arith.constant 0 : index
    %c0_21 = arith.constant 0 : index
    %49 = vector.load %arg4[%48, %c0_20, %c0_21] : memref<8x8x32xf32, #tpu.memory_space<vmem>>, vector<1x8x32xf32>
    %50 = vector.shape_cast %49 : vector<1x8x32xf32> to vector<8x32xf32>
    %51 = vector.shape_cast %47 : vector<8x32xf32> to vector<1x8x32xf32>
    tpu.vector_store %arg4[%48, %c0_20, %c0_21], %51 {strides = array<i32>} : memref<8x8x32xf32, #tpu.memory_space<vmem>>, vector<1x8x32xf32>,
    %c1_i32 = arith.constant 1 : i32
    %52 = arith.index_cast %c1_i32 : i32 to index
    %c0_22 = arith.constant 0 : index
    %c0_23 = arith.constant 0 : index
    %53 = vector.load %arg7[%52, %c0_22, %c0_23] : memref<8x8x128xf32, #tpu.memory_space<vmem>>, vector<1x8x128xf32>
    %54 = vector.shape_cast %53 : vector<1x8x128xf32> to vector<8x128xf32>
    %cst_24 = arith.constant dense<0.000000e+00> : vector<8x128xf32>
    %55 = tpu.matmul %47, %11, %cst_24 {dimension_numbers = #tpu.dot_dimension_numbers<[1], [0], [0], [1], [0, 0, 1, 1], [], []>} : vector<8x32xf32>, vector<32x128xf32>, vector<8x128xf32> -> vector<8x128xf32>
    %56 = arith.addf %54, %55 : vector<8x128xf32>
    %57 = arith.mulf %20, %56 : vector<8x128xf32>
    %58 = arith.negf %57 : vector<8x128xf32>
    %59 = math.exp %58 : vector<8x128xf32>
    %cst_25 = arith.constant 1.000000e+00 : f32
    %60 = vector.broadcast %cst_25 : f32 to vector<8x128xf32>
    %61 = arith.addf %60, %59 : vector<8x128xf32>
    %62 = arith.divf %60, %61 : vector<8x128xf32>
    %63 = arith.mulf %20, %62 : vector<8x128xf32>
    %64 = arith.addf %63, %23 : vector<8x128xf32>
    %65 = vector.extract_strided_slice %64 {offsets = [0, 0], sizes = [8, 32], strides = [1, 1]} : vector<8x128xf32> to vector<8x32xf32>
    %66 = vector.extract_strided_slice %64 {offsets = [0, 32], sizes = [8, 32], strides = [1, 1]} : vector<8x128xf32> to vector<8x32xf32>
    %67 = vector.extract_strided_slice %64 {offsets = [0, 64], sizes = [8, 32], strides = [1, 1]} : vector<8x128xf32> to vector<8x32xf32>
    %68 = vector.extract_strided_slice %64 {offsets = [0, 96], sizes = [8, 32], strides = [1, 1]} : vector<8x128xf32> to vector<8x32xf32>
    %69 = arith.mulf %66, %45 : vector<8x32xf32>
    %70 = arith.mulf %65, %67 : vector<8x32xf32>
    %71 = arith.addf %69, %70 : vector<8x32xf32>
    %72 = math.tanh %71 : vector<8x32xf32>
    %73 = arith.mulf %68, %72 : vector<8x32xf32>
    %74 = arith.index_cast %c1_i32 : i32 to index
    %c0_26 = arith.constant 0 : index
    %c0_27 = arith.constant 0 : index
    %75 = vector.load %arg4[%74, %c0_26, %c0_27] : memref<8x8x32xf32, #tpu.memory_space<vmem>>, vector<1x8x32xf32>
    %76 = vector.shape_cast %75 : vector<1x8x32xf32> to vector<8x32xf32>
    %77 = vector.shape_cast %73 : vector<8x32xf32> to vector<1x8x32xf32>
    tpu.vector_store %arg4[%74, %c0_26, %c0_27], %77 {strides = array<i32>} : memref<8x8x32xf32, #tpu.memory_space<vmem>>, vector<1x8x32xf32>,
    %c2_i32 = arith.constant 2 : i32
    %78 = arith.index_cast %c2_i32 : i32 to index
    %c0_28 = arith.constant 0 : index
    %c0_29 = arith.constant 0 : index
    %79 = vector.load %arg7[%78, %c0_28, %c0_29] : memref<8x8x128xf32, #tpu.memory_space<vmem>>, vector<1x8x128xf32>
    %80 = vector.shape_cast %79 : vector<1x8x128xf32> to vector<8x128xf32>
    %cst_30 = arith.constant dense<0.000000e+00> : vector<8x128xf32>
    %81 = tpu.matmul %73, %11, %cst_30 {dimension_numbers = #tpu.dot_dimension_numbers<[1], [0], [0], [1], [0, 0, 1, 1], [], []>} : vector<8x32xf32>, vector<32x128xf32>, vector<8x128xf32> -> vector<8x128xf32>
    %82 = arith.addf %80, %81 : vector<8x128xf32>
    %83 = arith.mulf %20, %82 : vector<8x128xf32>
    %84 = arith.negf %83 : vector<8x128xf32>
    %85 = math.exp %84 : vector<8x128xf32>
    %cst_31 = arith.constant 1.000000e+00 : f32
    %86 = vector.broadcast %cst_31 : f32 to vector<8x128xf32>
    %87 = arith.addf %86, %85 : vector<8x128xf32>
    %88 = arith.divf %86, %87 : vector<8x128xf32>
    %89 = arith.mulf %20, %88 : vector<8x128xf32>
    %90 = arith.addf %89, %23 : vector<8x128xf32>
    %91 = vector.extract_strided_slice %90 {offsets = [0, 0], sizes = [8, 32], strides = [1, 1]} : vector<8x128xf32> to vector<8x32xf32>
    %92 = vector.extract_strided_slice %90 {offsets = [0, 32], sizes = [8, 32], strides = [1, 1]} : vector<8x128xf32> to vector<8x32xf32>
    %93 = vector.extract_strided_slice %90 {offsets = [0, 64], sizes = [8, 32], strides = [1, 1]} : vector<8x128xf32> to vector<8x32xf32>
    %94 = vector.extract_strided_slice %90 {offsets = [0, 96], sizes = [8, 32], strides = [1, 1]} : vector<8x128xf32> to vector<8x32xf32>
    %95 = arith.mulf %92, %71 : vector<8x32xf32>
    %96 = arith.mulf %91, %93 : vector<8x32xf32>
    %97 = arith.addf %95, %96 : vector<8x32xf32>
    %98 = math.tanh %97 : vector<8x32xf32>
    %99 = arith.mulf %94, %98 : vector<8x32xf32>
    %100 = arith.index_cast %c2_i32 : i32 to index
    %c0_32 = arith.constant 0 : index
    %c0_33 = arith.constant 0 : index
    %101 = vector.load %arg4[%100, %c0_32, %c0_33] : memref<8x8x32xf32, #tpu.memory_space<vmem>>, vector<1x8x32xf32>
    %102 = vector.shape_cast %101 : vector<1x8x32xf32> to vector<8x32xf32>
    %103 = vector.shape_cast %99 : vector<8x32xf32> to vector<1x8x32xf32>
    tpu.vector_store %arg4[%100, %c0_32, %c0_33], %103 {strides = array<i32>} : memref<8x8x32xf32, #tpu.memory_space<vmem>>, vector<1x8x32xf32>,
    %c3_i32 = arith.constant 3 : i32
    %104 = arith.index_cast %c3_i32 : i32 to index
    %c0_34 = arith.constant 0 : index
    %c0_35 = arith.constant 0 : index
    %105 = vector.load %arg7[%104, %c0_34, %c0_35] : memref<8x8x128xf32, #tpu.memory_space<vmem>>, vector<1x8x128xf32>
    %106 = vector.shape_cast %105 : vector<1x8x128xf32> to vector<8x128xf32>
    %cst_36 = arith.constant dense<0.000000e+00> : vector<8x128xf32>
    %107 = tpu.matmul %99, %11, %cst_36 {dimension_numbers = #tpu.dot_dimension_numbers<[1], [0], [0], [1], [0, 0, 1, 1], [], []>} : vector<8x32xf32>, vector<32x128xf32>, vector<8x128xf32> -> vector<8x128xf32>
    %108 = arith.addf %106, %107 : vector<8x128xf32>
    %109 = arith.mulf %20, %108 : vector<8x128xf32>
    %110 = arith.negf %109 : vector<8x128xf32>
    %111 = math.exp %110 : vector<8x128xf32>
    %cst_37 = arith.constant 1.000000e+00 : f32
    %112 = vector.broadcast %cst_37 : f32 to vector<8x128xf32>
    %113 = arith.addf %112, %111 : vector<8x128xf32>
    %114 = arith.divf %112, %113 : vector<8x128xf32>
    %115 = arith.mulf %20, %114 : vector<8x128xf32>
    %116 = arith.addf %115, %23 : vector<8x128xf32>
    %117 = vector.extract_strided_slice %116 {offsets = [0, 0], sizes = [8, 32], strides = [1, 1]} : vector<8x128xf32> to vector<8x32xf32>
    %118 = vector.extract_strided_slice %116 {offsets = [0, 32], sizes = [8, 32], strides = [1, 1]} : vector<8x128xf32> to vector<8x32xf32>
    %119 = vector.extract_strided_slice %116 {offsets = [0, 64], sizes = [8, 32], strides = [1, 1]} : vector<8x128xf32> to vector<8x32xf32>
    %120 = vector.extract_strided_slice %116 {offsets = [0, 96], sizes = [8, 32], strides = [1, 1]} : vector<8x128xf32> to vector<8x32xf32>
    %121 = arith.mulf %118, %97 : vector<8x32xf32>
    %122 = arith.mulf %117, %119 : vector<8x32xf32>
    %123 = arith.addf %121, %122 : vector<8x32xf32>
    %124 = math.tanh %123 : vector<8x32xf32>
    %125 = arith.mulf %120, %124 : vector<8x32xf32>
    %126 = arith.index_cast %c3_i32 : i32 to index
    %c0_38 = arith.constant 0 : index
    %c0_39 = arith.constant 0 : index
    %127 = vector.load %arg4[%126, %c0_38, %c0_39] : memref<8x8x32xf32, #tpu.memory_space<vmem>>, vector<1x8x32xf32>
    %128 = vector.shape_cast %127 : vector<1x8x32xf32> to vector<8x32xf32>
    %129 = vector.shape_cast %125 : vector<8x32xf32> to vector<1x8x32xf32>
    tpu.vector_store %arg4[%126, %c0_38, %c0_39], %129 {strides = array<i32>} : memref<8x8x32xf32, #tpu.memory_space<vmem>>, vector<1x8x32xf32>,
    %c4_i32 = arith.constant 4 : i32
    %130 = arith.index_cast %c4_i32 : i32 to index
    %c0_40 = arith.constant 0 : index
    %c0_41 = arith.constant 0 : index
    %131 = vector.load %arg7[%130, %c0_40, %c0_41] : memref<8x8x128xf32, #tpu.memory_space<vmem>>, vector<1x8x128xf32>
    %132 = vector.shape_cast %131 : vector<1x8x128xf32> to vector<8x128xf32>
    %cst_42 = arith.constant dense<0.000000e+00> : vector<8x128xf32>
    %133 = tpu.matmul %125, %11, %cst_42 {dimension_numbers = #tpu.dot_dimension_numbers<[1], [0], [0], [1], [0, 0, 1, 1], [], []>} : vector<8x32xf32>, vector<32x128xf32>, vector<8x128xf32> -> vector<8x128xf32>
    %134 = arith.addf %132, %133 : vector<8x128xf32>
    %135 = arith.mulf %20, %134 : vector<8x128xf32>
    %136 = arith.negf %135 : vector<8x128xf32>
    %137 = math.exp %136 : vector<8x128xf32>
    %cst_43 = arith.constant 1.000000e+00 : f32
    %138 = vector.broadcast %cst_43 : f32 to vector<8x128xf32>
    %139 = arith.addf %138, %137 : vector<8x128xf32>
    %140 = arith.divf %138, %139 : vector<8x128xf32>
    %141 = arith.mulf %20, %140 : vector<8x128xf32>
    %142 = arith.addf %141, %23 : vector<8x128xf32>
    %143 = vector.extract_strided_slice %142 {offsets = [0, 0], sizes = [8, 32], strides = [1, 1]} : vector<8x128xf32> to vector<8x32xf32>
    %144 = vector.extract_strided_slice %142 {offsets = [0, 32], sizes = [8, 32], strides = [1, 1]} : vector<8x128xf32> to vector<8x32xf32>
    %145 = vector.extract_strided_slice %142 {offsets = [0, 64], sizes = [8, 32], strides = [1, 1]} : vector<8x128xf32> to vector<8x32xf32>
    %146 = vector.extract_strided_slice %142 {offsets = [0, 96], sizes = [8, 32], strides = [1, 1]} : vector<8x128xf32> to vector<8x32xf32>
    %147 = arith.mulf %144, %123 : vector<8x32xf32>
    %148 = arith.mulf %143, %145 : vector<8x32xf32>
    %149 = arith.addf %147, %148 : vector<8x32xf32>
    %150 = math.tanh %149 : vector<8x32xf32>
    %151 = arith.mulf %146, %150 : vector<8x32xf32>
    %152 = arith.index_cast %c4_i32 : i32 to index
    %c0_44 = arith.constant 0 : index
    %c0_45 = arith.constant 0 : index
    %153 = vector.load %arg4[%152, %c0_44, %c0_45] : memref<8x8x32xf32, #tpu.memory_space<vmem>>, vector<1x8x32xf32>
    %154 = vector.shape_cast %153 : vector<1x8x32xf32> to vector<8x32xf32>
    %155 = vector.shape_cast %151 : vector<8x32xf32> to vector<1x8x32xf32>
    tpu.vector_store %arg4[%152, %c0_44, %c0_45], %155 {strides = array<i32>} : memref<8x8x32xf32, #tpu.memory_space<vmem>>, vector<1x8x32xf32>,
    %c5_i32 = arith.constant 5 : i32
    %156 = arith.index_cast %c5_i32 : i32 to index
    %c0_46 = arith.constant 0 : index
    %c0_47 = arith.constant 0 : index
    %157 = vector.load %arg7[%156, %c0_46, %c0_47] : memref<8x8x128xf32, #tpu.memory_space<vmem>>, vector<1x8x128xf32>
    %158 = vector.shape_cast %157 : vector<1x8x128xf32> to vector<8x128xf32>
    %cst_48 = arith.constant dense<0.000000e+00> : vector<8x128xf32>
    %159 = tpu.matmul %151, %11, %cst_48 {dimension_numbers = #tpu.dot_dimension_numbers<[1], [0], [0], [1], [0, 0, 1, 1], [], []>} : vector<8x32xf32>, vector<32x128xf32>, vector<8x128xf32> -> vector<8x128xf32>
    %160 = arith.addf %158, %159 : vector<8x128xf32>
    %161 = arith.mulf %20, %160 : vector<8x128xf32>
    %162 = arith.negf %161 : vector<8x128xf32>
    %163 = math.exp %162 : vector<8x128xf32>
    %cst_49 = arith.constant 1.000000e+00 : f32
    %164 = vector.broadcast %cst_49 : f32 to vector<8x128xf32>
    %165 = arith.addf %164, %163 : vector<8x128xf32>
    %166 = arith.divf %164, %165 : vector<8x128xf32>
    %167 = arith.mulf %20, %166 : vector<8x128xf32>
    %168 = arith.addf %167, %23 : vector<8x128xf32>
    %169 = vector.extract_strided_slice %168 {offsets = [0, 0], sizes = [8, 32], strides = [1, 1]} : vector<8x128xf32> to vector<8x32xf32>
    %170 = vector.extract_strided_slice %168 {offsets = [0, 32], sizes = [8, 32], strides = [1, 1]} : vector<8x128xf32> to vector<8x32xf32>
    %171 = vector.extract_strided_slice %168 {offsets = [0, 64], sizes = [8, 32], strides = [1, 1]} : vector<8x128xf32> to vector<8x32xf32>
    %172 = vector.extract_strided_slice %168 {offsets = [0, 96], sizes = [8, 32], strides = [1, 1]} : vector<8x128xf32> to vector<8x32xf32>
    %173 = arith.mulf %170, %149 : vector<8x32xf32>
    %174 = arith.mulf %169, %171 : vector<8x32xf32>
    %175 = arith.addf %173, %174 : vector<8x32xf32>
    %176 = math.tanh %175 : vector<8x32xf32>
    %177 = arith.mulf %172, %176 : vector<8x32xf32>
    %178 = arith.index_cast %c5_i32 : i32 to index
    %c0_50 = arith.constant 0 : index
    %c0_51 = arith.constant 0 : index
    %179 = vector.load %arg4[%178, %c0_50, %c0_51] : memref<8x8x32xf32, #tpu.memory_space<vmem>>, vector<1x8x32xf32>
    %180 = vector.shape_cast %179 : vector<1x8x32xf32> to vector<8x32xf32>
    %181 = vector.shape_cast %177 : vector<8x32xf32> to vector<1x8x32xf32>
    tpu.vector_store %arg4[%178, %c0_50, %c0_51], %181 {strides = array<i32>} : memref<8x8x32xf32, #tpu.memory_space<vmem>>, vector<1x8x32xf32>,
    %c6_i32 = arith.constant 6 : i32
    %182 = arith.index_cast %c6_i32 : i32 to index
    %c0_52 = arith.constant 0 : index
    %c0_53 = arith.constant 0 : index
    %183 = vector.load %arg7[%182, %c0_52, %c0_53] : memref<8x8x128xf32, #tpu.memory_space<vmem>>, vector<1x8x128xf32>
    %184 = vector.shape_cast %183 : vector<1x8x128xf32> to vector<8x128xf32>
    %cst_54 = arith.constant dense<0.000000e+00> : vector<8x128xf32>
    %185 = tpu.matmul %177, %11, %cst_54 {dimension_numbers = #tpu.dot_dimension_numbers<[1], [0], [0], [1], [0, 0, 1, 1], [], []>} : vector<8x32xf32>, vector<32x128xf32>, vector<8x128xf32> -> vector<8x128xf32>
    %186 = arith.addf %184, %185 : vector<8x128xf32>
    %187 = arith.mulf %20, %186 : vector<8x128xf32>
    %188 = arith.negf %187 : vector<8x128xf32>
    %189 = math.exp %188 : vector<8x128xf32>
    %cst_55 = arith.constant 1.000000e+00 : f32
    %190 = vector.broadcast %cst_55 : f32 to vector<8x128xf32>
    %191 = arith.addf %190, %189 : vector<8x128xf32>
    %192 = arith.divf %190, %191 : vector<8x128xf32>
    %193 = arith.mulf %20, %192 : vector<8x128xf32>
    %194 = arith.addf %193, %23 : vector<8x128xf32>
    %195 = vector.extract_strided_slice %194 {offsets = [0, 0], sizes = [8, 32], strides = [1, 1]} : vector<8x128xf32> to vector<8x32xf32>
    %196 = vector.extract_strided_slice %194 {offsets = [0, 32], sizes = [8, 32], strides = [1, 1]} : vector<8x128xf32> to vector<8x32xf32>
    %197 = vector.extract_strided_slice %194 {offsets = [0, 64], sizes = [8, 32], strides = [1, 1]} : vector<8x128xf32> to vector<8x32xf32>
    %198 = vector.extract_strided_slice %194 {offsets = [0, 96], sizes = [8, 32], strides = [1, 1]} : vector<8x128xf32> to vector<8x32xf32>
    %199 = arith.mulf %196, %175 : vector<8x32xf32>
    %200 = arith.mulf %195, %197 : vector<8x32xf32>
    %201 = arith.addf %199, %200 : vector<8x32xf32>
    %202 = math.tanh %201 : vector<8x32xf32>
    %203 = arith.mulf %198, %202 : vector<8x32xf32>
    %204 = arith.index_cast %c6_i32 : i32 to index
    %c0_56 = arith.constant 0 : index
    %c0_57 = arith.constant 0 : index
    %205 = vector.load %arg4[%204, %c0_56, %c0_57] : memref<8x8x32xf32, #tpu.memory_space<vmem>>, vector<1x8x32xf32>
    %206 = vector.shape_cast %205 : vector<1x8x32xf32> to vector<8x32xf32>
    %207 = vector.shape_cast %203 : vector<8x32xf32> to vector<1x8x32xf32>
    tpu.vector_store %arg4[%204, %c0_56, %c0_57], %207 {strides = array<i32>} : memref<8x8x32xf32, #tpu.memory_space<vmem>>, vector<1x8x32xf32>,
    %c7_i32 = arith.constant 7 : i32
    %208 = arith.index_cast %c7_i32 : i32 to index
    %c0_58 = arith.constant 0 : index
    %c0_59 = arith.constant 0 : index
    %209 = vector.load %arg7[%208, %c0_58, %c0_59] : memref<8x8x128xf32, #tpu.memory_space<vmem>>, vector<1x8x128xf32>
    %210 = vector.shape_cast %209 : vector<1x8x128xf32> to vector<8x128xf32>
    %cst_60 = arith.constant dense<0.000000e+00> : vector<8x128xf32>
    %211 = tpu.matmul %203, %11, %cst_60 {dimension_numbers = #tpu.dot_dimension_numbers<[1], [0], [0], [1], [0, 0, 1, 1], [], []>} : vector<8x32xf32>, vector<32x128xf32>, vector<8x128xf32> -> vector<8x128xf32>
    %212 = arith.addf %210, %211 : vector<8x128xf32>
    %213 = arith.mulf %20, %212 : vector<8x128xf32>
    %214 = arith.negf %213 : vector<8x128xf32>
    %215 = math.exp %214 : vector<8x128xf32>
    %cst_61 = arith.constant 1.000000e+00 : f32
    %216 = vector.broadcast %cst_61 : f32 to vector<8x128xf32>
    %217 = arith.addf %216, %215 : vector<8x128xf32>
    %218 = arith.divf %216, %217 : vector<8x128xf32>
    %219 = arith.mulf %20, %218 : vector<8x128xf32>
    %220 = arith.addf %219, %23 : vector<8x128xf32>
    %221 = vector.extract_strided_slice %220 {offsets = [0, 0], sizes = [8, 32], strides = [1, 1]} : vector<8x128xf32> to vector<8x32xf32>
    %222 = vector.extract_strided_slice %220 {offsets = [0, 32], sizes = [8, 32], strides = [1, 1]} : vector<8x128xf32> to vector<8x32xf32>
    %223 = vector.extract_strided_slice %220 {offsets = [0, 64], sizes = [8, 32], strides = [1, 1]} : vector<8x128xf32> to vector<8x32xf32>
    %224 = vector.extract_strided_slice %220 {offsets = [0, 96], sizes = [8, 32], strides = [1, 1]} : vector<8x128xf32> to vector<8x32xf32>
    %225 = arith.mulf %222, %201 : vector<8x32xf32>
    %226 = arith.mulf %221, %223 : vector<8x32xf32>
    %227 = arith.addf %225, %226 : vector<8x32xf32>
    %228 = math.tanh %227 : vector<8x32xf32>
    %229 = arith.mulf %224, %228 : vector<8x32xf32>
    %230 = arith.index_cast %c7_i32 : i32 to index
    %c0_62 = arith.constant 0 : index
    %c0_63 = arith.constant 0 : index
    %231 = vector.load %arg4[%230, %c0_62, %c0_63] : memref<8x8x32xf32, #tpu.memory_space<vmem>>, vector<1x8x32xf32>
    %232 = vector.shape_cast %231 : vector<1x8x32xf32> to vector<8x32xf32>
    %233 = vector.shape_cast %229 : vector<8x32xf32> to vector<1x8x32xf32>
    tpu.vector_store %arg4[%230, %c0_62, %c0_63], %233 {strides = array<i32>} : memref<8x8x32xf32, #tpu.memory_space<vmem>>, vector<1x8x32xf32>,
    %c8_i32 = arith.constant 8 : i32
    %c0_64 = arith.constant 0 : index
    %c0_65 = arith.constant 0 : index
    %c0_66 = arith.constant 0 : index
    %234 = vector.load %arg5[%c0_64, %c0_65, %c0_66] : memref<1x8x32xf32, #tpu.memory_space<vmem>>, vector<1x8x32xf32>
    %235 = vector.shape_cast %234 : vector<1x8x32xf32> to vector<8x32xf32>
    %236 = vector.shape_cast %229 : vector<8x32xf32> to vector<1x8x32xf32>
    tpu.vector_store %arg5[%c0_64, %c0_65, %c0_66], %236 {strides = array<i32>} : memref<1x8x32xf32, #tpu.memory_space<vmem>>, vector<1x8x32xf32>,
    %c0_67 = arith.constant 0 : index
    %c0_68 = arith.constant 0 : index
    %c0_69 = arith.constant 0 : index
    %237 = vector.load %arg6[%c0_67, %c0_68, %c0_69] : memref<1x8x32xf32, #tpu.memory_space<vmem>>, vector<1x8x32xf32>
    %238 = vector.shape_cast %237 : vector<1x8x32xf32> to vector<8x32xf32>
    %239 = vector.shape_cast %227 : vector<8x32xf32> to vector<1x8x32xf32>
    tpu.vector_store %arg6[%c0_67, %c0_68, %c0_69], %239 {strides = array<i32>} : memref<1x8x32xf32, #tpu.memory_space<vmem>>, vector<1x8x32xf32>,
    return
  }
}

</mosaic_0001>

<bundles_post_ra>
// kernel: lstm_encoder_forward.1
= control target key start
LH: loop header
LB: loop body
LE: loop exit
PB: predicated region body
PF: predicated region fallthrough
CT: control target
= control target key end

     0   :  { %12 = vsyncpa [#allocation4], 0  ;;  %v1295_v1 = vmov 0.0   ;;  %vm1296_vm0 = vmmov 0   ;;  %v1297_v4 = vmov 0   ;;  %s1580_s0 = inlined_call_operand.vmem [shape: f32[8,8,1], index: 0, kind: input, shape index: {}]   ;;  %s1581_s1 = inlined_call_operand.vmem [shape: f32[1,128], index: 1, kind: input, shape index: {}]   ;;  %s1582_s2 = inlined_call_operand.vmem [shape: f32[1,128], index: 2, kind: input, shape index: {}]   ;;  %s1583_s3 = inlined_call_operand.vmem [shape: f32[32,128], index: 3, kind: input, shape index: {}]   ;;  %s1584_s4 = inlined_call_operand.hbm [shape: f32[8,8,32], index: 4, kind: output, shape index: {0}]   ;;  %s1585_s5 = inlined_call_operand.hbm [shape: f32[1,8,32], index: 5, kind: output, shape index: {1}]   ;;  %s1586_s6 = inlined_call_operand.hbm [shape: f32[1,8,32], index: 6, kind: output, shape index: {2}]  }
   0x1   :  { %v1345_v0 = vld [vmem:[%s1583_s3 + $0x18] sm:$0xff]  ;;  %1081 = vmatprep.subr.mxu0 %v1295_v1  ;;  %v1351_v2 = vld [vmem:[%s1583_s3 + $0x10] sm:$0xff]  ;;  %1089 = vmatprep.mubr.msk.f32.mxu0 %vm1296_vm0, %v1295_v1  ;;  %v24_v3 = vld [vmem:[%s1580_s0] sm:$0xff] }
   0x2   :  { %1082 = vmatpush3.msra.mxu0 %v1345_v0  ;;  %1181 = vset.pattern.permute.xlu0 %v1297_v4 }
   0x3   :  { %13 = vsyncpa [#allocation6], 0  ;;  %1083 = vmatprep.subr.mxu0 %v1295_v1  ;;  %v1363_v5 = vld [vmem:[%s1583_s3 + $0x8] sm:$0xff]  ;;  %34 = vperm.xlu0 %1181, %v24_v3   ;;  %v1371_v6 = vld [vmem:[%s1583_s3] sm:$0xff]  ;;  %v112_v7 = vlaneseq  ;;  %v1298_v14 = vmov 1.0   ;;  %vm120_vm4 = vcmask 261120  }
   0x4   :  { %1084 = vmatpush3.msra.mxu0 %v1351_v2  ;;  %1092 = vmatprep.subr.mxu1 %v1295_v1  ;;  %v1401_v9 = vld [vmem:[%s1581_s1] ss:$0 sm:$0xff]  ;;  %s1299_s1 = smov 64   ;;  %v25_v33 = vld [vmem:[%s1580_s0 + $0x8] sm:$0xff]  ;;  %v26_v56 = vld [vmem:[%s1580_s0 + $0x10] sm:$0xff]  ;;  %s1302_s24 = smov [#allocation5]  }
   0x5   :  { %1085 = vmatprep.subr.mxu0 %v1295_v1  ;;  %1093 = vmatpush3.msra.mxu1 %v1345_v0  ;;  %v113_v10 = vand.u32 127, %v112_v7  ;;  %v1407_v12 = vld [vmem:[%s1582_s2] ss:$0 sm:$0xff]  ;;  %s1300_s2 = smov 32   ;;  %s999_s25 = sshll.u32 %s1302_s24, 4  ;;  %s1000_s25 = int_to_ptr.vmem [resolvable:$true] %s999_s25 }
   0x6   :  { %1086 = vmatpush3.msra.mxu0 %v1363_v5  ;;  %1094 = vmatprep.subr.mxu1 %v1295_v1  ;;  %s1303_s26 = smov [#allocation3]   ;;  %s1304_s28 = smov [#allocation7]  }
   0x7   :  { %1087 = vmatprep.subr.mxu0 %v1295_v1  ;;  %1095 = vmatpush3.msra.mxu1 %v1351_v2  ;;  %vm114_vm1 = vcmp.ge.s32.totalorder %v113_v10, 64  ;;  %vm115_vm2 = vcmp.lt.s32.totalorder %v113_v10, 96  ;;  %s986_s27 = sshll.u32 %s1303_s26, 4  ;;  %s1009_s29 = sshll.u32 %s1304_s28, 4  ;;  %s987_s27 = int_to_ptr.vmem [resolvable:$true] %s986_s27  ;;  %s1010_s29 = int_to_ptr.vmem [resolvable:$true] %s1009_s29 }
   0x8   :  { %1088 = vmatpush3.msra.mxu0 %v1371_v6  ;;  %1096 = vmatprep.subr.mxu1 %v1295_v1  ;;  %vm116_vm3 = vmand %vm114_vm1, %vm115_vm2  ;;  %s1231_s30 = scalar_lea.vmem %s1000_s25, 128  ;;  %p1236_p1 = scmp.lt.s32.totalorder %s1000_s25, %s1000_s25 }
   0x9   :  { %1090 = vmatmul.mubr.f32.vlgmr.msra.gmra.mxu0 %v1295_v1  ;;  %1097 = vmatpush3.msra.mxu1 %v1363_v5  ;;  %v1410_v15 = vsel %vm116_vm3, 2.0, %v1298_v14  ;;  %v1414_v24 = vsel %vm116_vm3, -1.0, %v1295_v1  ;;  %p1232_p0 = scmp.ne.s32.totalorder %s1000_s25, %s1231_s30  ;;  %p1237_p2 = scmp.lt.s32.totalorder %s1231_s30, %s1231_s30 }
   0xa   :  { %1098 = vmatprep.subr.mxu1 %v1295_v1  ;;  %1100 = vmatprep.mubr.msk.f32.mxu1 %vm1296_vm0, %v1295_v1 }
   0xb   :  { %1099 = vmatpush3.msra.mxu1 %v1371_v6  ;;  %1182 = vset.pattern.permute.xlu1 %v1297_v4  ;;  %p1238_p3 = por %p1237_p2, %p1236_p1 }
   0xc   :  { %1103 = vmatprep.subr.mxu0 %v1295_v1  ;;  %1111 = vmatprep.mubr.msk.f32.mxu0 %vm1296_vm0, %v1295_v1 }
   0xd   :  { %1104 = vmatpush3.msra.mxu0 %v1345_v0  ;;  %1114 = vmatprep.subr.mxu1 %v1295_v1  ;;  %p1239_p4 = pnand %p1238_p3, %p1232_p0 }
   0xe   :  { %1105 = vmatprep.subr.mxu0 %v1295_v1 }
   0xf   :  { %1106 = vmatpush3.msra.mxu0 %v1351_v2 }
  0x10   :  { %1107 = vmatprep.subr.mxu0 %v1295_v1 }
  0x11   :  { %1108 = vmatpush3.msra.mxu0 %v1363_v5 }
  0x12   :  { %1109 = vmatprep.subr.mxu0 %v1295_v1 }
  0x13   :  { %1110 = vmatpush3.msra.mxu0 %v1371_v6 }
  0x14   :  { %1125 = vmatprep.subr.mxu0 %v1295_v1 }
  0x7e   :  { %v35_v8 = vpop.permute.xlu0 %34 }
  0x7f   :  { %v78_v11 = vmul.f32 %v1401_v9, %v35_v8 }
  0x81   :  { %v92_v13 = vadd.f32 %v1407_v12, %v78_v11 }
  0xc9   :  { %v190_v16 = vpop.f32.mrf.mxu0 }
  0xca   :  { %v194_v17 = vadd.f32 %v190_v16, %v92_v13 }
  0xcb   :  { %v1091_v18 = vpop.f32.mrf.mxu0 }
  0xcc   :  { %v195_v19 = vmul.f32 %v194_v17, %v1410_v15 }
  0xce   :  { %v1026_v20 = vmul.f32 -1.442695, %v195_v19 }
  0xd0   :  { %1183 = vpow2.f32 %v1026_v20 }
  0xdd   :  { %v1184_v21 = vpop.eup %1183 }
  0xde   :  { %v199_v22 = vadd.f32 1.0, %v1184_v21 }
  0xe0   :  { %1185 = vrcp.f32 %v199_v22 }
  0xed   :  { %v1186_v23 = vpop.eup %1185 }
  0xee   :  { %v202_v25 = vmul.f32 %v1186_v23, %v1410_v15  ;;  %v27_v23 = vld [vmem:[%s1580_s0 + $0x18] sm:$0xff] }
  0xf0   :  { %v203_v26 = vadd.f32 %v202_v25, %v1414_v24 }
  0xf2   :  { %206 = vrot.lane.b32.xlu0 %v203_v26, %s1299_s1  ;;  %v204_v29 = vmul.f32 0.0, %v203_v26 }
 0x164   :  { %v207_v27 = vpop.permute.xlu0 %206 }
 0x165   :  { %v209_v28 = vmul.f32 %v207_v27, %v203_v26 }
 0x167   :  { %211 = vrot.lane.b32.xlu1 %v209_v28, %s1300_s2 }
 0x1d9   :  { %v212_v30 = vpop.permute.xlu1 %211 }
 0x1da   :  { %v214_v31 = vadd.f32 %v212_v30, %v204_v29 }
 0x1dc   :  { %1187 = vtanh.f32 %v214_v31 }
 0x1e9   :  { %v1188_v32 = vpop.eup %1187 }
 0x1ea   :  { %217 = vrot.lane.b32.xlu1 %v1188_v32, %s1299_s1 }
 0x1ee   :  { %39 = vperm.xlu1 %1182, %v25_v33  }
 0x25c   :  { %v218_v34 = vpop.permute.xlu1 %217 }
 0x25d   :  { %v220_v35 = vmul.f32 %v218_v34, %v203_v26 }
 0x25f   :  { %222 = vrot.lane.b32.xlu0 %v220_v35, %s1300_s2 }
 0x269   :  { %v40_v37 = vpop.permute.xlu1 %39 }
 0x26a   :  { %v79_v38 = vmul.f32 %v1401_v9, %v40_v37 }
 0x26c   :  { %v93_v39 = vadd.f32 %v1407_v12, %v79_v38 }
 0x2d1   :  { %v223_v36 = vpop.permute.xlu0 %222 }
 0x2d2   :  { %225 = vst.msk [vmem:[#allocation3] sm:$0xff] %vm120_vm4, %v223_v36  ;;  %1101 = vmatmul.mubr.msk.f32.vlgmr.msra.gmra.mxu1 %vm120_vm4, %v223_v36 }
 0x2d3   :  { %1115 = vmatpush3.msra.mxu1 %v1345_v0  ;;  %1122 = vmatprep.mubr.msk.f32.mxu1 %vm1296_vm0, %v1295_v1 }
 0x2d4   :  { %1116 = vmatprep.subr.mxu1 %v1295_v1 }
 0x2d5   :  { %1117 = vmatpush3.msra.mxu1 %v1351_v2 }
 0x2d6   :  { %1118 = vmatprep.subr.mxu1 %v1295_v1 }
 0x2d7   :  { %1119 = vmatpush3.msra.mxu1 %v1363_v5 }
 0x2d8   :  { %1120 = vmatprep.subr.mxu1 %v1295_v1 }
 0x2d9   :  { %1121 = vmatpush3.msra.mxu1 %v1371_v6 }
 0x2da   :  { %1136 = vmatprep.subr.mxu1 %v1295_v1 }
 0x392   :  { %v296_v40 = vpop.f32.mrf.mxu1 }
 0x393   :  { %v300_v41 = vadd.f32 %v296_v40, %v93_v39 }
 0x394   :  { %v1102_v42 = vpop.f32.mrf.mxu1 }
 0x395   :  { %v301_v43 = vmul.f32 %v300_v41, %v1410_v15 }
 0x397   :  { %v1028_v44 = vmul.f32 -1.442695, %v301_v43 }
 0x399   :  { %1189 = vpow2.f32 %v1028_v44 }
 0x3a6   :  { %v1190_v45 = vpop.eup %1189 }
 0x3a7   :  { %v305_v46 = vadd.f32 1.0, %v1190_v45 }
 0x3a9   :  { %1191 = vrcp.f32 %v305_v46 }
 0x3b6   :  { %v1192_v47 = vpop.eup %1191 }
 0x3b7   :  { %v308_v48 = vmul.f32 %v1192_v47, %v1410_v15  ;;  %v28_v47 = vld [vmem:[%s1580_s0 + $0x20] sm:$0xff] }
 0x3b9   :  { %v309_v49 = vadd.f32 %v308_v48, %v1414_v24 }
 0x3bb   :  { %312 = vrot.lane.b32.xlu0 %v309_v49, %s1299_s1  ;;  %v310_v52 = vmul.f32 %v309_v49, %v214_v31 }
 0x42d   :  { %v313_v50 = vpop.permute.xlu0 %312 }
 0x42e   :  { %v315_v51 = vmul.f32 %v313_v50, %v309_v49 }
 0x430   :  { %317 = vrot.lane.b32.xlu1 %v315_v51, %s1300_s2 }
 0x4a2   :  { %v318_v53 = vpop.permute.xlu1 %317 }
 0x4a3   :  { %v320_v54 = vadd.f32 %v318_v53, %v310_v52 }
 0x4a5   :  { %1193 = vtanh.f32 %v320_v54 }
 0x4b2   :  { %v1194_v55 = vpop.eup %1193 }
 0x4b3   :  { %323 = vrot.lane.b32.xlu0 %v1194_v55, %s1299_s1 }
 0x4b7   :  { %44 = vperm.xlu0 %1181, %v26_v56  }
 0x525   :  { %v324_v57 = vpop.permute.xlu0 %323 }
 0x526   :  { %v326_v58 = vmul.f32 %v324_v57, %v309_v49 }
 0x528   :  { %328 = vrot.lane.b32.xlu1 %v326_v58, %s1300_s2 }
 0x532   :  { %v45_v60 = vpop.permute.xlu0 %44 }
 0x533   :  { %v80_v61 = vmul.f32 %v1401_v9, %v45_v60 }
 0x535   :  { %v94_v62 = vadd.f32 %v1407_v12, %v80_v61 }
 0x59a   :  { %v329_v59 = vpop.permute.xlu1 %328 }
 0x59b   :  { %332 = vst.msk [vmem:[#allocation3 + $0x8] sm:$0xff] %vm120_vm4, %v329_v59  ;;  %1112 = vmatmul.mubr.msk.f32.vlgmr.msra.gmra.mxu0 %vm120_vm4, %v329_v59 }
 0x59c   :  { %1126 = vmatpush3.msra.mxu0 %v1345_v0  ;;  %1133 = vmatprep.mubr.msk.f32.mxu0 %vm1296_vm0, %v1295_v1 }
 0x59d   :  { %1127 = vmatprep.subr.mxu0 %v1295_v1 }
 0x59e   :  { %1128 = vmatpush3.msra.mxu0 %v1351_v2 }
 0x59f   :  { %1129 = vmatprep.subr.mxu0 %v1295_v1 }
 0x5a0   :  { %1130 = vmatpush3.msra.mxu0 %v1363_v5 }
 0x5a1   :  { %1131 = vmatprep.subr.mxu0 %v1295_v1 }
 0x5a2   :  { %1132 = vmatpush3.msra.mxu0 %v1371_v6 }
 0x5a3   :  { %1147 = vmatprep.subr.mxu0 %v1295_v1 }
 0x65b   :  { %v403_v63 = vpop.f32.mrf.mxu0 }
 0x65c   :  { %v407_v3 = vadd.f32 %v403_v63, %v94_v62 }
 0x65d   :  { %v1113_v4 = vpop.f32.mrf.mxu0 }
 0x65e   :  { %v408_v7 = vmul.f32 %v407_v3, %v1410_v15 }
 0x660   :  { %v1030_v8 = vmul.f32 -1.442695, %v408_v7 }
 0x662   :  { %1195 = vpow2.f32 %v1030_v8 }
 0x66f   :  { %v1196_v10 = vpop.eup %1195 }
 0x670   :  { %v412_v11 = vadd.f32 1.0, %v1196_v10 }
 0x672   :  { %1197 = vrcp.f32 %v412_v11 }
 0x67f   :  { %v1198_v13 = vpop.eup %1197 }
 0x680   :  { %v415_v14 = vmul.f32 %v1198_v13, %v1410_v15  ;;  %v29_v13 = vld [vmem:[%s1580_s0 + $0x28] sm:$0xff] }
 0x682   :  { %v416_v16 = vadd.f32 %v415_v14, %v1414_v24 }
 0x684   :  { %419 = vrot.lane.b32.xlu1 %v416_v16, %s1299_s1  ;;  %v417_v19 = vmul.f32 %v416_v16, %v320_v54 }
 0x6f6   :  { %v420_v17 = vpop.permute.xlu1 %419 }
 0x6f7   :  { %v422_v18 = vmul.f32 %v420_v17, %v416_v16 }
 0x6f9   :  { %424 = vrot.lane.b32.xlu0 %v422_v18, %s1300_s2 }
 0x76b   :  { %v425_v20 = vpop.permute.xlu0 %424 }
 0x76c   :  { %v427_v21 = vadd.f32 %v425_v20, %v417_v19 }
 0x76e   :  { %1199 = vtanh.f32 %v427_v21 }
 0x77b   :  { %v1200_v22 = vpop.eup %1199 }
 0x77c   :  { %430 = vrot.lane.b32.xlu1 %v1200_v22, %s1299_s1 }
 0x780   :  { %49 = vperm.xlu1 %1182, %v27_v23  }
 0x7ee   :  { %v431_v25 = vpop.permute.xlu1 %430 }
 0x7ef   :  { %v433_v26 = vmul.f32 %v431_v25, %v416_v16 }
 0x7f1   :  { %435 = vrot.lane.b32.xlu0 %v433_v26, %s1300_s2 }
 0x7fb   :  { %v50_v28 = vpop.permute.xlu1 %49 }
 0x7fc   :  { %v81_v29 = vmul.f32 %v1401_v9, %v50_v28 }
 0x7fe   :  { %v95_v30 = vadd.f32 %v1407_v12, %v81_v29 }
 0x863   :  { %v436_v27 = vpop.permute.xlu0 %435 }
 0x864   :  { %439 = vst.msk [vmem:[#allocation3 + $0x10] sm:$0xff] %vm120_vm4, %v436_v27  ;;  %1123 = vmatmul.mubr.msk.f32.vlgmr.msra.gmra.mxu1 %vm120_vm4, %v436_v27 }
 0x865   :  { %1137 = vmatpush3.msra.mxu1 %v1345_v0  ;;  %1144 = vmatprep.mubr.msk.f32.mxu1 %vm1296_vm0, %v1295_v1 }
 0x866   :  { %1138 = vmatprep.subr.mxu1 %v1295_v1 }
 0x867   :  { %1139 = vmatpush3.msra.mxu1 %v1351_v2 }
 0x868   :  { %1140 = vmatprep.subr.mxu1 %v1295_v1 }
 0x869   :  { %1141 = vmatpush3.msra.mxu1 %v1363_v5 }
 0x86a   :  { %1142 = vmatprep.subr.mxu1 %v1295_v1 }
 0x86b   :  { %1143 = vmatpush3.msra.mxu1 %v1371_v6 }
 0x86c   :  { %1158 = vmatprep.subr.mxu1 %v1295_v1 }
 0x924   :  { %v510_v31 = vpop.f32.mrf.mxu1 }
 0x925   :  { %v514_v32 = vadd.f32 %v510_v31, %v95_v30 }
 0x926   :  { %v1124_v33 = vpop.f32.mrf.mxu1 }
 0x927   :  { %v515_v34 = vmul.f32 %v514_v32, %v1410_v15  ;;  %v30_v33 = vld [vmem:[%s1580_s0 + $0x30] sm:$0xff] }
 0x929   :  { %v1032_v35 = vmul.f32 -1.442695, %v515_v34 }
 0x92b   :  { %1201 = vpow2.f32 %v1032_v35 }
 0x938   :  { %v1202_v36 = vpop.eup %1201 }
 0x939   :  { %v519_v37 = vadd.f32 1.0, %v1202_v36 }
 0x93b   :  { %1203 = vrcp.f32 %v519_v37 }
 0x948   :  { %v1204_v38 = vpop.eup %1203 }
 0x949   :  { %v522_v39 = vmul.f32 %v1204_v38, %v1410_v15 }
 0x94b   :  { %v523_v40 = vadd.f32 %v522_v39, %v1414_v24 }
 0x94d   :  { %526 = vrot.lane.b32.xlu0 %v523_v40, %s1299_s1  ;;  %v524_v43 = vmul.f32 %v523_v40, %v427_v21 }
 0x9bf   :  { %v527_v41 = vpop.permute.xlu0 %526 }
 0x9c0   :  { %v529_v42 = vmul.f32 %v527_v41, %v523_v40 }
 0x9c2   :  { %531 = vrot.lane.b32.xlu1 %v529_v42, %s1300_s2 }
 0xa34   :  { %v532_v44 = vpop.permute.xlu1 %531 }
 0xa35   :  { %v534_v45 = vadd.f32 %v532_v44, %v524_v43 }
 0xa37   :  { %1205 = vtanh.f32 %v534_v45 }
 0xa44   :  { %v1206_v46 = vpop.eup %1205 }
 0xa45   :  { %537 = vrot.lane.b32.xlu0 %v1206_v46, %s1299_s1 }
 0xa49   :  { %54 = vperm.xlu0 %1181, %v28_v47  }
 0xab7   :  { %v538_v48 = vpop.permute.xlu0 %537 }
 0xab8   :  { %v540_v49 = vmul.f32 %v538_v48, %v523_v40 }
 0xaba   :  { %542 = vrot.lane.b32.xlu1 %v540_v49, %s1300_s2 }
 0xac4   :  { %v55_v51 = vpop.permute.xlu0 %54 }
 0xac5   :  { %v82_v52 = vmul.f32 %v1401_v9, %v55_v51 }
 0xac7   :  { %v96_v53 = vadd.f32 %v1407_v12, %v82_v52 }
 0xb2c   :  { %v543_v50 = vpop.permute.xlu1 %542 }
 0xb2d   :  { %546 = vst.msk [vmem:[#allocation3 + $0x18] sm:$0xff] %vm120_vm4, %v543_v50  ;;  %1134 = vmatmul.mubr.msk.f32.vlgmr.msra.gmra.mxu0 %vm120_vm4, %v543_v50 }
 0xb2e   :  { %1148 = vmatpush3.msra.mxu0 %v1345_v0  ;;  %1155 = vmatprep.mubr.msk.f32.mxu0 %vm1296_vm0, %v1295_v1 }
 0xb2f   :  { %1149 = vmatprep.subr.mxu0 %v1295_v1 }
 0xb30   :  { %1150 = vmatpush3.msra.mxu0 %v1351_v2 }
 0xb31   :  { %1151 = vmatprep.subr.mxu0 %v1295_v1 }
 0xb32   :  { %1152 = vmatpush3.msra.mxu0 %v1363_v5 }
 0xb33   :  { %1153 = vmatprep.subr.mxu0 %v1295_v1 }
 0xb34   :  { %1154 = vmatpush3.msra.mxu0 %v1371_v6 }
 0xbed   :  { %v617_v54 = vpop.f32.mrf.mxu0 }
 0xbee   :  { %v621_v55 = vadd.f32 %v617_v54, %v96_v53 }
 0xbef   :  { %v1135_v56 = vpop.f32.mrf.mxu0 }
 0xbf0   :  { %v622_v57 = vmul.f32 %v621_v55, %v1410_v15  ;;  %v31_v56 = vld [vmem:[%s1580_s0 + $0x38] sm:$0xff]  ;;  %s1301_s0 = smov 96  }
 0xbf2   :  { %v1034_v58 = vmul.f32 -1.442695, %v622_v57 }
 0xbf4   :  { %1207 = vpow2.f32 %v1034_v58 }
 0xc01   :  { %v1208_v59 = vpop.eup %1207 }
 0xc02   :  { %v626_v60 = vadd.f32 1.0, %v1208_v59 }
 0xc04   :  { %1209 = vrcp.f32 %v626_v60 }
 0xc11   :  { %v1210_v61 = vpop.eup %1209 }
 0xc12   :  { %v629_v62 = vmul.f32 %v1210_v61, %v1410_v15 }
 0xc14   :  { %v630_v63 = vadd.f32 %v629_v62, %v1414_v24 }
 0xc16   :  { %633 = vrot.lane.b32.xlu1 %v630_v63, %s1299_s1  ;;  %v631_v7 = vmul.f32 %v630_v63, %v534_v45 }
 0xc88   :  { %v634_v3 = vpop.permute.xlu1 %633 }
 0xc89   :  { %v636_v4 = vmul.f32 %v634_v3, %v630_v63 }
 0xc8b   :  { %638 = vrot.lane.b32.xlu0 %v636_v4, %s1300_s2 }
 0xcfd   :  { %v639_v8 = vpop.permute.xlu0 %638 }
 0xcfe   :  { %v641_v10 = vadd.f32 %v639_v8, %v631_v7 }
 0xd00   :  { %1211 = vtanh.f32 %v641_v10 }
 0xd0d   :  { %v1212_v11 = vpop.eup %1211 }
 0xd0e   :  { %644 = vrot.lane.b32.xlu1 %v1212_v11, %s1299_s1 }
 0xd12   :  { %59 = vperm.xlu1 %1182, %v29_v13  }
 0xd80   :  { %v645_v14 = vpop.permute.xlu1 %644 }
 0xd81   :  { %v647_v16 = vmul.f32 %v645_v14, %v630_v63 }
 0xd83   :  { %649 = vrot.lane.b32.xlu0 %v647_v16, %s1300_s2 }
 0xd8d   :  { %v60_v18 = vpop.permute.xlu1 %59 }
 0xd8e   :  { %v83_v19 = vmul.f32 %v1401_v9, %v60_v18 }
 0xdf5   :  { %v650_v17 = vpop.permute.xlu0 %649 }
 0xdf6   :  { %653 = vst.msk [vmem:[#allocation3 + $0x20] sm:$0xff] %vm120_vm4, %v650_v17  ;;  %1145 = vmatmul.mubr.msk.f32.vlgmr.msra.gmra.mxu1 %vm120_vm4, %v650_v17 }
 0xdf7   :  { %1159 = vmatpush3.msra.mxu1 %v1345_v0  ;;  %1166 = vmatprep.mubr.msk.f32.mxu1 %vm1296_vm0, %v1295_v1  ;;  %v97_v0 = vadd.f32 %v1407_v12, %v83_v19 }
 0xdf8   :  { %1160 = vmatprep.subr.mxu1 %v1295_v1 }
 0xdf9   :  { %1161 = vmatpush3.msra.mxu1 %v1351_v2 }
 0xdfa   :  { %1162 = vmatprep.subr.mxu1 %v1295_v1 }
 0xdfb   :  { %1163 = vmatpush3.msra.mxu1 %v1363_v5 }
 0xdfc   :  { %1164 = vmatprep.subr.mxu1 %v1295_v1 }
 0xdfd   :  { %1165 = vmatpush3.msra.mxu1 %v1371_v6 }
 0xeb6   :  { %v724_v20 = vpop.f32.mrf.mxu1 }
 0xeb7   :  { %v728_v21 = vadd.f32 %v724_v20, %v97_v0 }
 0xeb8   :  { %v1146_v22 = vpop.f32.mrf.mxu1 }
 0xeb9   :  { %v729_v23 = vmul.f32 %v728_v21, %v1410_v15 }
 0xebb   :  { %v1036_v25 = vmul.f32 -1.442695, %v729_v23 }
 0xebd   :  { %1213 = vpow2.f32 %v1036_v25 }
 0xeca   :  { %v1214_v2 = vpop.eup %1213 }
 0xecb   :  { %v733_v26 = vadd.f32 1.0, %v1214_v2 }
 0xecd   :  { %1215 = vrcp.f32 %v733_v26 }
 0xeda   :  { %v1216_v5 = vpop.eup %1215 }
 0xedb   :  { %v736_v1 = vmul.f32 %v1216_v5, %v1410_v15 }
 0xedd   :  { %v737_v6 = vadd.f32 %v736_v1, %v1414_v24 }
 0xedf   :  { %740 = vrot.lane.b32.xlu0 %v737_v6, %s1299_s1  ;;  %v738_v29 = vmul.f32 %v737_v6, %v641_v10 }
 0xf51   :  { %v741_v27 = vpop.permute.xlu0 %740 }
 0xf52   :  { %v743_v28 = vmul.f32 %v741_v27, %v737_v6 }
 0xf54   :  { %745 = vrot.lane.b32.xlu1 %v743_v28, %s1300_s2 }
 0xfc6   :  { %v746_v30 = vpop.permute.xlu1 %745 }
 0xfc7   :  { %v748_v31 = vadd.f32 %v746_v30, %v738_v29 }
 0xfc9   :  { %1217 = vtanh.f32 %v748_v31 }
 0xfd6   :  { %v1218_v32 = vpop.eup %1217 }
 0xfd7   :  { %751 = vrot.lane.b32.xlu0 %v1218_v32, %s1299_s1 }
 0xfdb   :  { %64 = vperm.xlu0 %1181, %v30_v33  }
0x1049   :  { %v752_v34 = vpop.permute.xlu0 %751 }
0x104a   :  { %v754_v35 = vmul.f32 %v752_v34, %v737_v6 }
0x104c   :  { %756 = vrot.lane.b32.xlu1 %v754_v35, %s1300_s2 }
0x1056   :  { %v65_v37 = vpop.permute.xlu0 %64 }
0x1057   :  { %v84_v38 = vmul.f32 %v1401_v9, %v65_v37 }
0x1059   :  { %v98_v39 = vadd.f32 %v1407_v12, %v84_v38 }
0x10be   :  { %v757_v36 = vpop.permute.xlu1 %756 }
0x10bf   :  { %760 = vst.msk [vmem:[#allocation3 + $0x28] sm:$0xff] %vm120_vm4, %v757_v36  ;;  %1156 = vmatmul.mubr.msk.f32.vlgmr.msra.gmra.mxu0 %vm120_vm4, %v757_v36 }
0x117f   :  { %v831_v40 = vpop.f32.mrf.mxu0 }
0x1180   :  { %v835_v41 = vadd.f32 %v831_v40, %v98_v39 }
0x1181   :  { %v1157_v42 = vpop.f32.mrf.mxu0 }
0x1182   :  { %v836_v43 = vmul.f32 %v835_v41, %v1410_v15 }
0x1184   :  { %v1038_v44 = vmul.f32 -1.442695, %v836_v43 }
0x1186   :  { %1219 = vpow2.f32 %v1038_v44 }
0x1193   :  { %v1220_v45 = vpop.eup %1219 }
0x1194   :  { %v840_v46 = vadd.f32 1.0, %v1220_v45 }
0x1196   :  { %1221 = vrcp.f32 %v840_v46 }
0x11a3   :  { %v1222_v47 = vpop.eup %1221 }
0x11a4   :  { %v843_v48 = vmul.f32 %v1222_v47, %v1410_v15 }
0x11a6   :  { %v844_v49 = vadd.f32 %v843_v48, %v1414_v24 }
0x11a8   :  { %847 = vrot.lane.b32.xlu1 %v844_v49, %s1299_s1  ;;  %v845_v52 = vmul.f32 %v844_v49, %v748_v31 }
0x121a   :  { %v848_v50 = vpop.permute.xlu1 %847 }
0x121b   :  { %v850_v51 = vmul.f32 %v848_v50, %v844_v49 }
0x121d   :  { %852 = vrot.lane.b32.xlu0 %v850_v51, %s1300_s2 }
0x128f   :  { %v853_v53 = vpop.permute.xlu0 %852 }
0x1290   :  { %v855_v54 = vadd.f32 %v853_v53, %v845_v52 }
0x1292   :  { %1223 = vtanh.f32 %v855_v54 }
0x129f   :  { %v1224_v55 = vpop.eup %1223 }
0x12a0   :  { %858 = vrot.lane.b32.xlu1 %v1224_v55, %s1299_s1 }
0x12a4   :  { %69 = vperm.xlu1 %1182, %v31_v56  }
0x1312   :  { %v859_v57 = vpop.permute.xlu1 %858 }
0x1313   :  { %v861_v58 = vmul.f32 %v859_v57, %v844_v49 }
0x1315   :  { %863 = vrot.lane.b32.xlu0 %v861_v58, %s1300_s2 }
0x131f   :  { %v70_v60 = vpop.permute.xlu1 %69 }
0x1320   :  { %v85_v61 = vmul.f32 %v1401_v9, %v70_v60 }
0x1322   :  { %v99_v62 = vadd.f32 %v1407_v12, %v85_v61 }
0x1387   :  { %v864_v59 = vpop.permute.xlu0 %863 }
0x1388   :  { %867 = vst.msk [vmem:[#allocation3 + $0x30] sm:$0xff] %vm120_vm4, %v864_v59  ;;  %1167 = vmatmul.mubr.msk.f32.vlgmr.msra.gmra.mxu1 %vm120_vm4, %v864_v59 }
0x1448   :  { %v938_v63 = vpop.f32.mrf.mxu1 }
0x1449   :  { %v942_v3 = vadd.f32 %v938_v63, %v99_v62 }
0x144a   :  { %v1168_v4 = vpop.f32.mrf.mxu1 }
0x144b   :  { %v943_v7 = vmul.f32 %v942_v3, %v1410_v15 }
0x144d   :  { %v1040_v8 = vmul.f32 -1.442695, %v943_v7 }
0x144f   :  { %1225 = vpow2.f32 %v1040_v8 }
0x145c   :  { %v1226_v10 = vpop.eup %1225 }
0x145d   :  { %v947_v11 = vadd.f32 1.0, %v1226_v10 }
0x145f   :  { %1227 = vrcp.f32 %v947_v11 }
0x146c   :  { %v1228_v13 = vpop.eup %1227 }
0x146d   :  { %v950_v14 = vmul.f32 %v1228_v13, %v1410_v15 }
0x146f   :  { %v951_v16 = vadd.f32 %v950_v14, %v1414_v24 }
0x1471   :  { %954 = vrot.lane.b32.xlu0 %v951_v16, %s1299_s1  ;;  %v952_v12 = vmul.f32 %v951_v16, %v855_v54 }
0x14e3   :  { %v955_v9 = vpop.permute.xlu0 %954 }
0x14e4   :  { %v957_v17 = vmul.f32 %v955_v9, %v951_v16 }
0x14e6   :  { %959 = vrot.lane.b32.xlu1 %v957_v17, %s1300_s2 }
0x1558   :  { %v960_v18 = vpop.permute.xlu1 %959 }
0x1559   :  { %v962_v19 = vadd.f32 %v960_v18, %v952_v12 }
0x155b   :  { %1229 = vtanh.f32 %v962_v19 }
0x1568   :  { %v1230_v0 = vpop.eup %1229 }
0x1569   :  { %965 = vrot.lane.b32.xlu0 %v1230_v0, %s1299_s1 }
0x156d   :  { %977 = vrot.lane.b32.xlu0 %v962_v19, %s1301_s0 }
0x15db   :  { %v966_v20 = vpop.permute.xlu0 %965 }
0x15dc   :  { %v968_v21 = vmul.f32 %v966_v20, %v951_v16 }
0x15de   :  { %970 = vrot.lane.b32.xlu1 %v968_v21, %s1300_s2 }
0x15df   :  { %v978_v15 = vpop.permute.xlu0 %977 }
0x15e0   :  { %980 = vst.msk [vmem:[#allocation7] sm:$0xff] %vm120_vm4, %v978_v15 }
0x1650   :  { %v971_v24 = vpop.permute.xlu1 %970 }
0x1651   :  { %974 = vst.msk [vmem:[#allocation3 + $0x38] sm:$0xff] %vm120_vm4, %v971_v24  ;;  %975 = vst.msk [vmem:[#allocation5] sm:$0xff] %vm120_vm4, %v971_v24 }
0x1652   :  { %1242 = shalt.err (!%p1239_p4)
}
0x1653   :  { %1002 = dma.vmem_to_hbm [thread:$0]  %s1000_s25, 128, %s1585_s5, [#allocation6]  }
0x1654   :  { %s1251_s8 = scalar_lea.vmem %s987_s27, 1024  ;;  %p1256_p6 = scmp.lt.s32.totalorder %s987_s27, %s987_s27 }
0x1655   :  { %p1252_p5 = scmp.ne.s32.totalorder %s987_s27, %s1251_s8  ;;  %p1257_p7 = scmp.lt.s32.totalorder %s1251_s8, %s1251_s8 }
0x1657   :  { %p1258_p8 = por %p1257_p7, %p1256_p6 }
0x1659   :  { %p1259_p9 = pnand %p1258_p8, %p1252_p5 }
0x165b   :  { %1262 = shalt.err (!%p1259_p9)
}
0x165c   :  { %s1305_s9 = smov 128   ;;  %s1306_s1 = smov 8  }
0x165d   :  { %992 = dma.vmem_to_hbm [thread:$0]  %s987_s27, 1024, %s1584_s4, [#allocation4], %s1305_s9, %s1305_s9, %s1306_s1  }
0x165e   :  { %s1271_s11 = scalar_lea.vmem %s1010_s29, 128  ;;  %p1276_p11 = scmp.lt.s32.totalorder %s1010_s29, %s1010_s29 }
0x165f   :  { %p1272_p10 = scmp.ne.s32.totalorder %s1010_s29, %s1271_s11  ;;  %p1277_p12 = scmp.lt.s32.totalorder %s1271_s11, %s1271_s11 }
0x1661   :  { %p1278_p13 = por %p1277_p12, %p1276_p11 }
0x1663   :  { %p1279_p0 = pnand %p1278_p13, %p1272_p10 }
0x1665   :  { %1282 = shalt.err (!%p1279_p0)
}
0x1666   :  { %1012 = dma.vmem_to_hbm [thread:$0]  %s1010_s29, 128, %s1586_s6, [#allocation6]  }
0x1667   :  { %1291 = dma.done.wait [#allocation4], 1024  }
0x1668   :  { %1292 = vsyncadd [#allocation4], 4294966272 }
0x1669   :  { %1293 = dma.done.wait [#allocation6], 256  }
0x166a   :  { %1294 = vsyncadd [#allocation6], 4294967040 }
0x166b   :  { %1022 = vsyncpa [#allocation4], 1 }
0x166c   :  { %1023 = vsyncpa [#allocation6], 1 }

</bundles_post_ra>
